<compile_context>
chip_gen: v7x
topology: tpu7x:2x2x1
jax: 0.10.0
libtpu: 0.0.40
codegen_flags: <defaults>
</compile_context>

<pallas_src>
import functools

import jax
import jax.numpy as jnp
from jax.experimental import pallas as pl
from jax.experimental.pallas import tpu as pltpu


def _interp_dt_kernel(x0_ref, x1_ref, out_ref, diff_ref):
    # x0_ref, x1_ref: [B, D]  (full arrays, resident in VMEM across the grid)
    # out_ref:        [1, time_tile, D]  (per-batch, per-time-tile output block)
    # diff_ref:       [B, D]  VMEM scratch holding x1 - x0
    b = pl.program_id(0)

    # Hoisted diff: computed once at the start of each batch's time sweep,
    # reused for every subsequent time tile of that batch.
    @pl.when(pl.program_id(1) == 0)
    def _():
        diff_ref[...] = x1_ref[...] - x0_ref[...]

    row = diff_ref[pl.ds(b, 1), :]                 # (1, D) row for this batch
    _, tt, d = out_ref.shape
    out_ref[...] = jnp.broadcast_to(row[:, None, :], (1, tt, d))


def _sublane_multiple(dtype) -> int:
    # Sublane packing per dtype: 8 for f32, 16 for bf16, 32 for int8/fp8.
    return max(8, 32 // jnp.dtype(dtype).itemsize)


def _choose_time_tile(T, D, dtype, target_block_bytes=2 << 20):
    """Largest sublane-aligned divisor of T whose (time_tile, D) block <= ~2 MiB."""
    sub = _sublane_multiple(dtype)
    itemsize = jnp.dtype(dtype).itemsize
    row_bytes = max(1, D * itemsize)
    max_rows = max(sub, (target_block_bytes // row_bytes) // sub * sub)
    best = None
    t = sub
    while t <= min(T, max_rows):
        if T % t == 0:
            best = t
        t += sub
    if best is not None:
        return best
    # No aligned divisor fits; fall back to full T (block equals array dim -> legal).
    return T


def linear_interpolant_dt(x0, x1, time_steps, *, time_tile=None):
    """Pallas implementation of LinearInterpolantDT.forward.

    Args:
      x0, x1: [B, D] arrays (same shape/dtype).
      time_steps: static Python int T.
      time_tile: optional override; must divide T and be sublane-aligned (or == T).
    Returns:
      [B, T, D] array equal to (x1 - x0) broadcast along the time axis.
    """
    assert x0.shape == x1.shape and x0.ndim == 2
    B, D = x0.shape
    T = int(time_steps)
    sub = _sublane_multiple(x0.dtype)

    if time_tile is None:
        time_tile = _choose_time_tile(T, D, x0.dtype)
    assert T % time_tile == 0, "time_tile must divide time_steps"
    assert time_tile == T or time_tile % sub == 0, (
        f"time_tile must be a multiple of {sub} for dtype {x0.dtype} (or equal T)")

    grid = (B, T // time_tile)

    return pl.pallas_call(
        _interp_dt_kernel,
        out_shape=jax.ShapeDtypeStruct((B, T, D), x0.dtype),
        grid_spec=pltpu.PrefetchScalarGridSpec(
            num_scalar_prefetch=0,
            grid=grid,
            in_specs=[
                # Full [B, D] inputs; constant block index -> DMA'd once, resident.
                pl.BlockSpec((B, D), lambda b, t: (0, 0)),
                pl.BlockSpec((B, D), lambda b, t: (0, 0)),
            ],
            # Per-batch, contiguous [time_tile, D] output slab.
            out_specs=pl.BlockSpec((1, time_tile, D), lambda b, t: (b, t, 0)),
            scratch_shapes=[pltpu.VMEM((B, D), x0.dtype)],
        ),
        compiler_params=pltpu.CompilerParams(
            dimension_semantics=("parallel", "arbitrary"),
        ),
    )(x0, x1)


def _reference(x0, x1, time_steps):
    dt_xt = x1 - x0
    return jnp.broadcast_to(dt_xt[:, None, :], (x0.shape[0], time_steps, x0.shape[1]))


if __name__ == "__main__":
    key = jax.random.PRNGKey(0)
    k0, k1 = jax.random.split(key)

    B, D = 2, 128          # batch, hidden (hidden lane-aligned to 128)
    T = 16                 # time_steps

    x0 = jax.random.normal(k0, (B, D), dtype=jnp.float32)
    x1 = jax.random.normal(k1, (B, D), dtype=jnp.float32)

    ref = _reference(x0, x1, T)

    # Auto-tiled path.
    fn_auto = jax.jit(functools.partial(linear_interpolant_dt, time_steps=T))
    out_auto = jax.block_until_ready(fn_auto(x0, x1))
    assert out_auto.shape == (B, T, D), out_auto.shape
    assert jnp.allclose(out_auto, ref), "mismatch vs reference (auto tile)"

    # Explicit multi-time-tile path (exercises scratch reuse across time tiles).
    fn_tiled = jax.jit(
        functools.partial(linear_interpolant_dt, time_steps=T, time_tile=8))
    out_tiled = jax.block_until_ready(fn_tiled(x0, x1))
    assert jnp.allclose(out_tiled, ref), "mismatch vs reference (time_tile=8)"

    print("KERNEL_OK")
</pallas_src>

<mosaic_0001>
module attributes {stable_mosaic.version = 11 : i64} {
  func.func @_interp_dt_kernel(%arg0: i32, %arg1: i32, %arg2: memref<2x128xf32, #tpu.memory_space<vmem>>, %arg3: memref<2x128xf32, #tpu.memory_space<vmem>>, %arg4: memref<1x16x128xf32, #tpu.memory_space<vmem>>, %arg5: memref<2x128xf32, #tpu.memory_space<vmem>>) attributes {dimension_semantics = [#tpu.dimension_semantics<parallel>, #tpu.dimension_semantics<arbitrary>], iteration_bounds = array<i64: 2, 1>, scalar_prefetch = 0 : i64, scratch_operands = 1 : i64, tpu.core_type = #tpu.core_type<tc>, window_params = [{pipeline_mode = #tpu.pipeline_mode<synchronous>, transform_indices = @transform_0, window_bounds = array<i64: 2, 128>}, {pipeline_mode = #tpu.pipeline_mode<synchronous>, transform_indices = @transform_1, window_bounds = array<i64: 2, 128>}, {transform_indices = @transform_2, window_bounds = array<i64: 1, 16, 128>}]} {
    %c0_i32 = arith.constant 0 : i32
    %0 = arith.cmpi eq, %arg1, %c0_i32 : i32
    %1 = arith.extui %0 : i1 to i32
    %c0_i32_0 = arith.constant 0 : i32
    %2 = arith.cmpi ne, %1, %c0_i32_0 : i32
    scf.if %2 {
      %c0_4 = arith.constant 0 : index
      %c0_5 = arith.constant 0 : index
      %9 = vector.load %arg3[%c0_4, %c0_5] : memref<2x128xf32, #tpu.memory_space<vmem>>, vector<2x128xf32>
      %c0_6 = arith.constant 0 : index
      %c0_7 = arith.constant 0 : index
      %10 = vector.load %arg2[%c0_6, %c0_7] : memref<2x128xf32, #tpu.memory_space<vmem>>, vector<2x128xf32>
      %11 = arith.subf %9, %10 : vector<2x128xf32>
      %c0_8 = arith.constant 0 : index
      %c0_9 = arith.constant 0 : index
      %12 = vector.load %arg5[%c0_8, %c0_9] : memref<2x128xf32, #tpu.memory_space<vmem>>, vector<2x128xf32>
      tpu.vector_store %arg5[%c0_8, %c0_9], %11 {strides = array<i32>} : memref<2x128xf32, #tpu.memory_space<vmem>>, vector<2x128xf32>,
    } else {
    }
    %3 = arith.index_cast %arg0 : i32 to index
    %c0 = arith.constant 0 : index
    %4 = vector.load %arg5[%3, %c0] : memref<2x128xf32, #tpu.memory_space<vmem>>, vector<1x128xf32>
    %5 = vector.shape_cast %4 : vector<1x128xf32> to vector<1x1x128xf32>
    %6 = vector.shape_cast %5 : vector<1x1x128xf32> to vector<1x1x128xf32>
    %7 = vector.broadcast %6 : vector<1x1x128xf32> to vector<1x16x128xf32>
    %c0_1 = arith.constant 0 : index
    %c0_2 = arith.constant 0 : index
    %c0_3 = arith.constant 0 : index
    %8 = vector.load %arg4[%c0_1, %c0_2, %c0_3] : memref<1x16x128xf32, #tpu.memory_space<vmem>>, vector<1x16x128xf32>
    tpu.vector_store %arg4[%c0_1, %c0_2, %c0_3], %7 {strides = array<i32>} : memref<1x16x128xf32, #tpu.memory_space<vmem>>, vector<1x16x128xf32>,
    return
  }
  func.func @transform_0(%arg0: i32, %arg1: i32) -> (i32, i32) {
    %c0_i32 = arith.constant 0 : i32
    %c0_i32_0 = arith.constant 0 : i32
    %c0_i32_1 = arith.constant 0 : i32
    return %c0_i32, %c0_i32_0 : i32, i32
  }
  func.func @transform_1(%arg0: i32, %arg1: i32) -> (i32, i32) {
    %c0_i32 = arith.constant 0 : i32
    %c0_i32_0 = arith.constant 0 : i32
    %c0_i32_1 = arith.constant 0 : i32
    return %c0_i32, %c0_i32_0 : i32, i32
  }
  func.func @transform_2(%arg0: i32, %arg1: i32) -> (i32, i32, i32) {
    %c0_i32 = arith.constant 0 : i32
    %c0_i32_0 = arith.constant 0 : i32
    return %arg0, %arg1, %c0_i32 : i32, i32, i32
  }
}

</mosaic_0001>

<bundles_post_ra>
// kernel: linear_interpolant_dt.1
= control target key start
LH: loop header
LB: loop body
LE: loop exit
PB: predicated region body
PF: predicated region fallthrough
CT: control target
= control target key end

     0   :  { %7 = vsyncpa [#allocation4], 0  ;;  %s621_s0 = inlined_call_operand.hbm [shape: f32[2,128], index: 0, kind: input, shape index: {}]   ;;  %s622_s1 = inlined_call_operand.vmem [shape: f32[2,128], index: 1, kind: input, shape index: {}]   ;;  %s623_s2 = inlined_call_operand.hbm [shape: f32[2,16,128], index: 2, kind: output, shape index: {}]  }
   0x1   :  { %8 = vsyncpa [#allocation5], 0 }
   0x2   :  { %10 = vsyncpa [#allocation5 + $0x1], 0  ;;  %s469_s9 = smov 0   ;;  %s471_s10 = smov 0  }
   0x3   :  { %s473_s11 = smov 0   ;;  %s475_s12 = smov 0  }
   0x4   :  { %s477_s13 = smov 0   ;;  %s479_s14 = smov 0  }
   0x5 LB: > { %s256_s15 = sadd.s32 4294967295, %s448_s14   ;;  %s257_s16 = sadd.s32 4294967294, %s448_s14   ;;  %s448_s14 = sphi %s479_s14, %s16_s14   ;;  %s444_s13 = sphi %s477_s13, %s641_s13   ;;  %s440_s12 = sphi %s475_s12, %s640_s12   ;;  %s436_s11 = sphi %s473_s11, %s639_s11   ;;  %s432_s10 = sphi %s471_s10, %s638_s10   ;;  %s428_s9 = sphi %s469_s9, %s637_s9  }
   0x6   : > { %s28_s17 = sadd.s32 1, %s444_s13  ;;  %s79_s18 = sadd.s32 1, %s436_s11 }
   0x7   : > { %p30_p0 = scmp.ge.s32.totalorder %s28_s17, 2  ;;  %p89_p1 = scmp.ne.s32.totalorder %s436_s11, %s432_s10 }
   0x8   : > { %p90_p2 = scmp.eq.s32.totalorder %s256_s15, 1  ;;  %p95_p3 = scmp.ne.s32.totalorder %s432_s10, %s428_s9 }
   0x9   : > { %s643_s17 = smov (%p30_p0, %s28_s17), 0  ;;  %p96_p5 = scmp.eq.s32.totalorder %s257_s16, 1 }
   0xa   : > { %p509_p4 = por %p90_p2, %p89_p1  ;;  %s74_s20 = ssub.s32 %s444_s13, %s643_s17 }
   0xb   : > { %p258_p6 = scmp.ge.s32.totalorder %s448_s14, 1  ;;  %p77_p7 = scmp.eq.s32.totalorder %s74_s20, 0 }
   0xc   : > { %s628_s19 = scalar_select %p509_p4, 1, 0 }
   0xd   : > { %p516_p8 = por %p96_p5, %p95_p3  ;;  %p103_p9 = scmp.lt.s32.totalorder %s448_s14, 3 }
   0xe   : > { %s522_s22 = scalar_select %p77_p7, %s436_s11, %s79_s18  }
   0xf   : > { %s629_s21 = scalar_select %p516_p8, 1, 0 }
  0x10   : > { %p524_p10 = pnand %p258_p6, %p103_p9  ;;  %p528_p11 = scmp.eq.s32.totalorder %s256_s15, 0 }
  0x11   : > { %s450_s25 = smov [#allocation3]   ;;  %s338_s30 = scalar_lea.hbm %s621_s0, 32 }
  0x12   : > { %s630_s23 = scalar_select %p524_p10, 1, 0 }
  0x13   : > { %s631_s24 = scalar_select %p528_p11, 1, 0 }
  0x14   : > { %p276_p12 = pneg %p524_p10  ;;  %s116_s26 = sshll.u32 %s450_s25, 4  ;;  %s117_s26 = int_to_ptr.vmem [resolvable:$true] %s116_s26 }
  0x15   : > { %p339_p0 = scmp.ne.s32.totalorder %s621_s0, %s338_s30  ;;  %p345_p5 = scmp.lt.u32.totalorder %s338_s30, %s621_s0 }
  0x16   : > { %p536_p13 = pnand %p528_p11, %p276_p12 }
  0x18   : > { %p340_p1 = pneg %p536_p13 }
  0x1a   : > { %p341_p2 = pnand %p340_p1, %p339_p0 }
  0x1c   : > { %p342_p3 = pneg %p341_p2 }
  0x1e   : > { %p347_p6 = pnand %p345_p5, %p342_p3 }
  0x20   : > { %350 = shalt.err (!%p347_p6)
}
  0x21   : > { %s351_s7 = scalar_lea.vmem %s117_s26, 32  ;;  %p359_p8 = scmp.lt.s32.totalorder %s117_s26, %s117_s26 }
  0x22   : > { %p352_p7 = scmp.ne.s32.totalorder %s117_s26, %s351_s7  ;;  %p360_p4 = scmp.lt.s32.totalorder %s351_s7, %s351_s7 }
  0x24   : > { %p354_p9 = pnand %p352_p7, %p340_p1  ;;  %p361_p11 = por %p360_p4, %p359_p8 }
  0x26   : > { %p355_p12 = pneg %p354_p9 }
  0x28   : > { %p362_p10 = pnand %p361_p11, %p355_p12 }
  0x2a   : > { %365 = shalt.err (!%p362_p10)
}
  0x2b   : > { %279 = dma.hbm_to_vmem [thread:$0]  (!%p536_p13), %s621_s0, 32, %s117_s26, [#allocation4]  }
  0x2c   : > { %p633_p0 = scmp.ne.s32.totalorder %s630_s23, 0 }
  0x2d   : > { %p634_p2 = scmp.ne.s32.totalorder (!%p633_p0), %s631_s24, 0 }
  0x2e   : > { %132 = sbr.rel (%p633_p0) target bundleno = 82 (0x52), region = 28 }
  0x35   : > { %419 = dma.done.wait (%p634_p2), [#allocation4], 32  }
  0x36   : > { %421 = vsyncadd (%p634_p2), [#allocation4], 4294967264  ;;  %s146_s16 = sand.u32 1, %s432_s10   ;;  %v154_v0 = vld [vmem:[%s622_s1] sm:$0x3]  ;;  %s269_s27 = sshll.u32 %s440_s12, 8 }
  0x37   : > { %s262_s18 = sshll.u32 %s146_s16, 4  ;;  %v155_v1 = vld [vmem:[#allocation3] sm:$0x3]  ;;  %s572_s29 = scalar_lea.hbm %s623_s2, %s269_s27 }
  0x38   : > { %v156_v2 = vsub.f32 %v154_v0, %v155_v1  ;;  %s148_s23 = scalar_lea.vmem [#allocation6], %s262_s18  ;;  %s158_s30 = scalar_lea.vmem [#allocation2], %s440_s12 }
  0x39   : > { %s182_s26 = sshll.u32 %s148_s23, 4  ;;  %s575_s3 = scalar_lea.sflag [#allocation5], %s146_s16  ;;  %s567_s26 = int_to_ptr.vmem [resolvable:$true] %s182_s26 }
  0x3a   : > { %157 = vst [vmem:[#allocation2] sm:$0x3] %v156_v2  ;;  %s366_s4 = scalar_lea.vmem %s567_s26, 256  ;;  %p635_p8 = scmp.ne.s32.totalorder %s628_s19, 0 }
  0x3b   : > { %p367_p4 = scmp.ne.s32.totalorder %s567_s26, %s366_s4  ;;  %s451_s5 = smov [#allocation6]  }
  0x3c   : > { %s370_s6 = sshll.u32 %s451_s5, 4  ;;  %s371_s6 = int_to_ptr.vmem [resolvable:$false] %s370_s6 }
  0x3d   : > { %p368_p10 = pnand %p367_p4, %p635_p8  ;;  %s372_s7 = scalar_lea.vmem %s371_s6, 512 }
  0x3e   : > { %p373_p13 = scmp.lt.s32.totalorder %s567_s26, %s371_s6  ;;  %p374_p1 = scmp.lt.s32.totalorder %s372_s7, %s366_s4 }
  0x3f   : > { %p369_p11 = pneg %p368_p10 }
  0x40   : > { %p375_p3 = por %p374_p1, %p373_p13 }
  0x41   : > { %v263_v3 = vld [vmem:[%s158_s30] ss:$0 sm:$0xff] }
  0x42   : > { %164 = vst [vmem:[%s148_s23] sm:$0xff] %v263_v3  ;;  %165 = vst [vmem:[%s148_s23 + $0x8] sm:$0xff] %v263_v3  ;;  %p376_p5 = pnand %p375_p3, %p369_p11 }
  0x44   : > { %379 = shalt.err (!%p376_p5)
}
  0x45   : > { %s380_s12 = scalar_lea.hbm %s572_s29, 256  ;;  %s384_s16 = scalar_lea.hbm %s623_s2, 512 }
  0x46   : > { %p381_p6 = scmp.ne.s32.totalorder %s572_s29, %s380_s12  ;;  %p385_p12 = scmp.lt.u32.totalorder %s572_s29, %s623_s2 }
  0x47   : > { %p386_p0 = scmp.lt.u32.totalorder %s384_s16, %s380_s12  ;;  %p388_p4 = scmp.lt.u32.totalorder %s380_s12, %s572_s29 }
  0x48   : > { %p382_p7 = pnand %p381_p6, %p635_p8 }
  0x49   : > { %p387_p2 = por %p386_p0, %p385_p12 }
  0x4a   : > { %p383_p9 = pneg %p382_p7 }
  0x4b   : > { %p389_p10 = por %p388_p4, %p387_p2 }
  0x4d   : > { %p390_p11 = pnand %p389_p10, %p383_p9 }
  0x4f   : > { %393 = shalt.err (!%p390_p11)
}
  0x50   : > { %s452_s25 = smov 128   ;;  %s453_s23 = smov 8  }
  0x51   : > { %274 = dma.vmem_to_hbm [thread:$0]  (%p635_p8), %s567_s26, 256, %s572_s29, %s575_s3, %s452_s25, %s452_s25, %s453_s23  }
  0x52 PF: > { %p286_p13 = scmp.ge.s32.totalorder %s448_s14, 2  ;;  %s197_s27 = sand.u32 1, %s428_s9  }
  0x53   : > { %p636_p1 = scmp.ne.s32.totalorder %s629_s21, 0  ;;  %s198_s24 = scalar_lea.sflag [#allocation5], %s197_s27 }
  0x55   : > { %p281_p3 = pnand %p286_p13, %p636_p1 }
  0x57   : > { %423 = dma.done.wait (!%p281_p3), %s198_s24, 256  }
  0x58   : > { %425 = vsyncadd (!%p281_p3), %s198_s24, 4294967040  ;;  %s16_s14 = sadd.s32 1, %s448_s14   ;;  %s637_s9 = smov %s432_s10 }
  0x59   : > { %p13_p5 = scmp.ge.s32.totalorder %s16_s14, 4   ;;  %s638_s10 = smov %s436_s11 }
  0x5a   : > { %s639_s11 = smov %s522_s22  ;;  %s640_s12 = smov %s444_s13 }
  0x5b   : > { %s641_s13 = smov %s643_s17  ;;  %15 = sbr.rel (!%p13_p5) target bundleno = 5 (0x5), region = 70 }
  0x62   :  { %203 = vsyncpa [#allocation4], 1 }
  0x63   :  { %205 = vsyncpa [#allocation4 + $0x1], 1 }
  0x64   :  { %206 = vsyncpa [#allocation5], 1 }
  0x65   :  { %208 = vsyncpa [#allocation5 + $0x1], 1 }

</bundles_post_ra>
